<compile_context>
chip_gen: v7x
topology: tpu7x:2x2x1
jax: 0.10.0
libtpu: 0.0.40
codegen_flags: <defaults>
</compile_context>

<pallas_src>
import math

import jax
import jax.numpy as jnp
from jax.experimental import pallas as pl
from jax.experimental.pallas import tpu as pltpu

_LANE = 128
_MAX_LANE = 8192                 # widest flattened last dim we will use
_TARGET_TILE_BYTES = 2 << 20     # ~2 MiB per block
_MIN_BLOCK_ROWS = 32             # full vregs even for int8/fp8 sublane packing


def _copy_kernel(x_ref, o_ref):
    # Pure contiguous materialization — one lane-dense tile per grid step.
    o_ref[...] = x_ref[...]


def _cdiv(a, b):
    return -(-a // b)


def _round_up(a, b):
    return _cdiv(a, b) * b


def _resolve_shape(shape, total):
    """Resolve a single -1 dimension exactly like torch.view does."""
    shape = list(shape)
    if -1 in shape:
        idx = shape.index(-1)
        known = 1
        for i, s in enumerate(shape):
            if i != idx:
                known *= s
        assert known > 0 and total % known == 0, "view shape incompatible with input size"
        shape[idx] = total // known
    assert math.prod(shape) == total, "view shape incompatible with input size"
    return tuple(shape)


def _copy_2d(flat2d, rows, lane, dtype, logical_bytes):
    """Tiled lane-dense Pallas copy of a (rows, lane) array."""
    dsize = jnp.dtype(dtype).itemsize
    # Rows per block for ~2 MiB tiles, rounded down to a multiple of 32.
    target_rows = max(
        _MIN_BLOCK_ROWS,
        (_TARGET_TILE_BYTES // (lane * dsize)) // _MIN_BLOCK_ROWS * _MIN_BLOCK_ROWS,
    )
    if rows <= target_rows:
        if rows > 2 * _MIN_BLOCK_ROWS:
            # Big enough to split in (at least) two blocks so the "parallel"
            # grid axis can be sharded across both v7x TensorCores.
            block_rows = _round_up(_cdiv(rows, 2), _MIN_BLOCK_ROWS)
        else:
            block_rows = rows  # full-extent block: always legal, no masking
    else:
        block_rows = target_rows

    grid = (_cdiv(rows, block_rows),)  # ragged last block handled by edge masking

    return pl.pallas_call(
        _copy_kernel,
        out_shape=jax.ShapeDtypeStruct((rows, lane), dtype),
        grid_spec=pltpu.PrefetchScalarGridSpec(
            num_scalar_prefetch=0,
            grid=grid,
            in_specs=[pl.BlockSpec((block_rows, lane), lambda i: (i, 0))],
            out_specs=pl.BlockSpec((block_rows, lane), lambda i: (i, 0)),
        ),
        compiler_params=pltpu.CompilerParams(
            dimension_semantics=("parallel",),
        ),
        cost_estimate=pl.CostEstimate(
            flops=0, transcendentals=0, bytes_accessed=int(2 * logical_bytes)
        ),
    )(flat2d)


def pallas_view(x, shape, contiguous: bool = False, min_pallas_bytes: int = 1 << 18):
    """Pallas-backed equivalent of View(shape, contiguous)(x)."""
    # TODO(synk): `contiguous=False` in torch is a zero-cost alias; JAX arrays
    # are always contiguous, so both flags share the same copy/reshape path.
    del contiguous
    total = x.size
    out_shape = _resolve_shape(shape, total)
    dsize = jnp.dtype(x.dtype).itemsize

    # Small-size fast path: torch.view is metadata only; a plain reshape
    # matches it exactly and beats any kernel launch for tiny tensors.
    if total == 0 or total * dsize < min_pallas_bytes:
        return x.reshape(out_shape)

    flat = jnp.ravel(x)

    if total % _LANE == 0:
        # No-padding path: pick the widest lane dim (multiple of 128) that
        # divides the flat length -> wide unmasked stores, fewer grid steps.
        lane = _LANE
        for mult in range(_MAX_LANE // _LANE, 0, -1):
            cand = mult * _LANE
            if total % cand == 0:
                lane = cand
                break
        rows = total // lane
        out2d = _copy_2d(flat.reshape(rows, lane), rows, lane, x.dtype, total * dsize)
        return out2d.reshape(out_shape)

    # Fallback (rare): flat length not a lane multiple — minimal pad, lane-dense
    # copy, then slice. Costs one extra pass over the data; acceptable because
    # this path only triggers when numel % 128 != 0.
    lane = _LANE
    padded = _round_up(total, lane)
    flat = jnp.concatenate([flat, jnp.zeros((padded - total,), x.dtype)])
    rows = padded // lane
    out2d = _copy_2d(flat.reshape(rows, lane), rows, lane, x.dtype, total * dsize)
    return out2d.reshape(-1)[:total].reshape(out_shape)


if __name__ == "__main__":
    key = jax.random.PRNGKey(0)
    # Typical kospeech usage: View(shape=(batch, channels, -1)) after convs.
    B, C, H, W = 2, 4, 16, 16
    x = jax.random.normal(key, (B, C, H, W), dtype=jnp.float32)

    # Equivalent of View(shape=(B, C, -1), contiguous=True).
    # Force the Pallas copy path even at this small size so the kernel runs.
    y = pallas_view(x, (B, C, -1), contiguous=True, min_pallas_bytes=0)
    y = jax.block_until_ready(y)

    ref = x.reshape(B, C, H * W)
    assert y.shape == ref.shape and y.dtype == ref.dtype
    assert bool(jnp.all(y == ref))

    # Ragged flat length (not a multiple of 128) exercises the padded fallback.
    x2 = jax.random.normal(jax.random.PRNGKey(1), (2, 3, 35), dtype=jnp.float32)
    y2 = jax.block_until_ready(pallas_view(x2, (2, -1), min_pallas_bytes=0))
    ref2 = x2.reshape(2, 105)
    assert y2.shape == ref2.shape and bool(jnp.all(y2 == ref2))

    # -1 resolution in a leading dim + bf16 dtype (sublane packing path).
    x3 = jax.random.normal(jax.random.PRNGKey(2), (4, 8, 32), dtype=jnp.bfloat16)
    y3 = jax.block_until_ready(pallas_view(x3, (-1, 64), min_pallas_bytes=0))
    ref3 = x3.reshape(16, 64)
    assert y3.shape == ref3.shape and y3.dtype == ref3.dtype
    assert bool(jnp.all(y3 == ref3))

    print("KERNEL_OK")
</pallas_src>

<mosaic_0001>
module attributes {stable_mosaic.version = 11 : i64} {
  func.func @_copy_kernel(%arg0: i32, %arg1: memref<1x2048xf32, #tpu.memory_space<vmem>>, %arg2: memref<1x2048xf32, #tpu.memory_space<vmem>>) attributes {dimension_semantics = [#tpu.dimension_semantics<parallel>], iteration_bounds = array<i64: 1>, scalar_prefetch = 0 : i64, scratch_operands = 0 : i64, tpu.core_type = #tpu.core_type<tc>, window_params = [{transform_indices = @transform_0, window_bounds = array<i64: 1, 2048>}, {transform_indices = @transform_1, window_bounds = array<i64: 1, 2048>}]} {
    %c0 = arith.constant 0 : index
    %c0_0 = arith.constant 0 : index
    %0 = vector.load %arg1[%c0, %c0_0] : memref<1x2048xf32, #tpu.memory_space<vmem>>, vector<1x2048xf32>
    %c0_1 = arith.constant 0 : index
    %c0_2 = arith.constant 0 : index
    %1 = vector.load %arg2[%c0_1, %c0_2] : memref<1x2048xf32, #tpu.memory_space<vmem>>, vector<1x2048xf32>
    tpu.vector_store %arg2[%c0_1, %c0_2], %0 {strides = array<i32>} : memref<1x2048xf32, #tpu.memory_space<vmem>>, vector<1x2048xf32>,
    return
  }
  func.func @transform_0(%arg0: i32) -> (i32, i32) {
    %c0_i32 = arith.constant 0 : i32
    %c0_i32_0 = arith.constant 0 : i32
    return %arg0, %c0_i32 : i32, i32
  }
  func.func @transform_1(%arg0: i32) -> (i32, i32) {
    %c0_i32 = arith.constant 0 : i32
    %c0_i32_0 = arith.constant 0 : i32
    return %arg0, %c0_i32 : i32, i32
  }
}

</mosaic_0001>

<bundles_post_ra>
// kernel: tpu_custom_call.1
= control target key start
LH: loop header
LB: loop body
LE: loop exit
PB: predicated region body
PF: predicated region fallthrough
CT: control target
= control target key end

     0   :  { %6 = vsyncpa [#allocation3], 0  ;;  %s126_s0 = inlined_call_operand.hbm [shape: f32[1,2048], index: 0, kind: input, shape index: {}]   ;;  %s127_s1 = inlined_call_operand.hbm [shape: f32[1,2048], index: 1, kind: output, shape index: {}]  }
   0x1   :  { %7 = vsyncpa [#allocation4], 0  ;;  %s90_s6 = smov [#allocation2]   ;;  %s42_s10 = scalar_lea.hbm %s126_s0, 256 }
   0x2   :  { %s14_s7 = sshll.u32 %s90_s6, 4  ;;  %p43_p0 = scmp.ne.s32.totalorder %s126_s0, %s42_s10  ;;  %s15_s7 = int_to_ptr.vmem [resolvable:$true] %s14_s7 }
   0x3   :  { %p46_p1 = scmp.lt.u32.totalorder %s42_s10, %s126_s0 }
   0x5   :  { %p48_p2 = pnand %p46_p1, %p43_p0 }
   0x7   :  { %51 = shalt.err (!%p48_p2)
}
   0x8   :  { %s52_s15 = scalar_lea.vmem %s15_s7, 256  ;;  %p57_p4 = scmp.lt.s32.totalorder %s15_s7, %s15_s7 }
   0x9   :  { %p53_p3 = scmp.ne.s32.totalorder %s15_s7, %s52_s15  ;;  %p58_p5 = scmp.lt.s32.totalorder %s52_s15, %s52_s15 }
   0xb   :  { %p59_p6 = por %p58_p5, %p57_p4 }
   0xd   :  { %p60_p7 = pnand %p59_p6, %p53_p3 }
   0xf   :  { %63 = shalt.err (!%p60_p7)
}
  0x10   :  { %17 = dma.hbm_to_vmem [thread:$0]  %s126_s0, 256, %s15_s7, [#allocation3]  }
  0x11   :  { %86 = dma.done.wait [#allocation3], 256  }
  0x12   :  { %87 = vsyncadd [#allocation3], 4294967040  ;;  %s91_s18 = smov [#allocation5]   ;;  %v21_v0 = vld [vmem:[#allocation2] sm:$0xff]  ;;  %v22_v1 = vld [vmem:[#allocation2 + $0x8] sm:$0xff] }
  0x13   :  { %s31_s19 = sshll.u32 %s91_s18, 4  ;;  %23 = vst [vmem:[#allocation5] sm:$0xff] %v21_v0  ;;  %24 = vst [vmem:[#allocation5 + $0x8] sm:$0xff] %v22_v1  ;;  %s32_s19 = int_to_ptr.vmem [resolvable:$true] %s31_s19 }
  0x14   :  { %s64_s20 = scalar_lea.vmem %s32_s19, 256  ;;  %p69_p9 = scmp.lt.s32.totalorder %s32_s19, %s32_s19 }
  0x15   :  { %p65_p8 = scmp.ne.s32.totalorder %s32_s19, %s64_s20  ;;  %p70_p10 = scmp.lt.s32.totalorder %s64_s20, %s64_s20 }
  0x17   :  { %p71_p11 = por %p70_p10, %p69_p9 }
  0x19   :  { %p72_p12 = pnand %p71_p11, %p65_p8 }
  0x1b   :  { %75 = shalt.err (!%p72_p12)
}
  0x1c   :  { %s76_s0 = scalar_lea.hbm %s127_s1, 256 }
  0x1d   :  { %p77_p13 = scmp.ne.s32.totalorder %s127_s1, %s76_s0  ;;  %p80_p0 = scmp.lt.u32.totalorder %s76_s0, %s127_s1 }
  0x1f   :  { %p82_p1 = pnand %p80_p0, %p77_p13 }
  0x21   :  { %85 = shalt.err (!%p82_p1)
}
  0x22   :  { %34 = dma.vmem_to_hbm [thread:$0]  %s32_s19, 256, %s127_s1, [#allocation4]  }
  0x23   :  { %88 = dma.done.wait [#allocation4], 256  }
  0x24   :  { %89 = vsyncadd [#allocation4], 4294967040 }
  0x25   :  { %38 = vsyncpa [#allocation3], 1 }
  0x26   :  { %39 = vsyncpa [#allocation4], 1 }

</bundles_post_ra>
